<compile_context>
chip_gen: v6e
topology: v6e:2x2x1
jax: 0.10.0
libtpu: 0.0.40
codegen_flags: <defaults>
</compile_context>

<pallas_src>
import jax
import jax.numpy as jnp
from jax.experimental import pallas as pl
from jax.experimental.pallas import tpu as pltpu


# ---------------------------------------------------------------------------
# Trace-time hardware queries (conservative fallbacks everywhere).
# ---------------------------------------------------------------------------

def _tpu_generation():
    """Best-effort TPU generation from device_kind; 0 if unknown."""
    try:
        kind = jax.devices()[0].device_kind.lower()
    except Exception:
        return 0
    for g in (7, 6, 5, 4, 3, 2):
        if ("v%d" % g) in kind or ("%dx" % g) in kind:
            return g
    return 0


def _vmem_capacity_bytes(gen):
    try:
        return int(pltpu.get_tpu_info().vmem_capacity_bytes)
    except Exception:
        pass
    return (64 if gen >= 7 else 128) * 1024 * 1024


def _vmem_plan(gen):
    """Returns (block budget for tile choice, vmem_limit_bytes)."""
    cap = _vmem_capacity_bytes(gen)
    if cap >= 100 * 1024 * 1024:
        # 128 MiB chips (v5e / v6e): big tiles, generous scoped limit.
        return 56 * 1024 * 1024, 96 * 1024 * 1024
    # 64 MiB chips (v7x): leave headroom for compiler scratch.
    return 24 * 1024 * 1024, 40 * 1024 * 1024


# ---------------------------------------------------------------------------
# Kernel.
# ---------------------------------------------------------------------------

def _make_kernel(exp_dtype, approx_recip):
    """Builds the attention kernel for one (TB, C, S) batch block."""

    def kernel(x_ref, sym_ref, o_ref):
        # x_ref, sym_ref : (TB, C, S)   Q/V source and K (compute dtype)
        # o_ref          : (TB, C, TQ)  lane-dense output tile
        tb, C, S = x_ref.shape
        tq = o_ref.shape[-1]
        scale = 1.0 / (C ** 0.5)
        cdt = x_ref.dtype
        qi = pl.program_id(1)

        # Hoisted out of the b loop (JAX does not CSE broadcasts).
        ones_row = jnp.ones((1, S), dtype=cdt)

        def body(b, carry):
            v_b = x_ref[b]                       # (C, S): V (and the Q source)
            k_b = sym_ref[b]                     # (C, S): K
            if tq == S:
                q_b = v_b
            else:
                q_start = pl.multiple_of(qi * tq, tq)
                q_b = jax.lax.dynamic_slice_in_dim(v_b, q_start, tq, axis=1)

            # Fold 1/sqrt(C) into Q: O(C*TQ) multiplies instead of O(TQ*S).
            qs = q_b * scale

            # scores = Q^T K (contract the head dim), f32 MXU accumulation.
            s = jax.lax.dot_general(
                qs, k_b, (((0,), (0,)), ((), ())),
                preferred_element_type=jnp.float32)            # (TQ, S) f32

            # Numerically stable, UNNORMALIZED softmax weights.  exp in bf16
            # on v6e/v7x (bf16 EUP, halves slab footprint), f32 otherwise.
            m = jnp.max(s, axis=-1, keepdims=True)              # XLU
            p = jnp.exp((s - m).astype(exp_dtype))              # EUP, (TQ, S)
            pc = p.astype(cdt)                                  # no-op on bf16 path

            # out = V P^T (contract keys) -> (C, TQ): lane-dense store.
            o = jax.lax.dot_general(
                v_b, pc, (((1,), (1,)), ((), ())),
                preferred_element_type=jnp.float32)

            # Softmax denominator on the idle MXU (ones-row matmul) instead of
            # an O(TQ*S) cross-lane XLU reduction.
            denom = jax.lax.dot_general(
                ones_row, pc, (((1,), (1,)), ((), ())),
                preferred_element_type=jnp.float32)              # (1, TQ) f32

            inv = pl.reciprocal(denom, approx=approx_recip)      # EUP slot
            o_ref[b] = (o * inv).astype(o_ref.dtype)
            return carry

        # fori_loop (not a static Python loop) bounds the live range of the
        # (TQ, S) score/probability slab to a single iteration.
        jax.lax.fori_loop(0, tb, body, 0)

    return kernel


# ---------------------------------------------------------------------------
# Tiling / wrapper.
# ---------------------------------------------------------------------------

def _choose_tiles(B, C, S, in_dtype, out_dtype, budget):
    """Pick (TB, TQ): batch slices per grid step and the Q (sequence) tile."""
    in_bytes = jnp.dtype(in_dtype).itemsize
    out_bytes = jnp.dtype(out_dtype).itemsize

    def pad_sublanes(rows, nbytes):
        mult = 8 * max(1, 4 // nbytes)     # 8 for f32, 16 for bf16, 32 for int8
        return ((rows + mult - 1) // mult) * mult

    # Q tile: full S when small; otherwise the largest 128-multiple (256+
    # preferred for the 256x256 MXUs) dividing S so the score slab is bounded.
    tq = S
    if S > 1024:
        for cand in (1024, 512, 256, 128):
            if S % cand == 0:
                tq = cand
                break
    # TODO(synk): flash-style KV-tiled online softmax for very large S that is
    # not divisible by 128 (today the full S x S f32 slab must fit in VMEM).

    # Score/probability slab counted ONCE (fori_loop bounds its live range).
    fixed = 3 * tq * S * 4
    # Per-(n,h)-slice blocks, sublane-padding aware, double-buffered.
    per_slice = (2 * 2 * pad_sublanes(C, in_bytes) * S * in_bytes
                 + 2 * pad_sublanes(C, out_bytes) * tq * out_bytes)

    tb = 1
    for cand in (2, 4, 8, 16, 32):
        if B % cand == 0 and fixed + cand * per_slice <= budget:
            tb = cand
    # Keep >= 2 grid steps on the (parallel) batch axis for megacore sharding.
    while tb > 1 and B // tb < 2:
        tb //= 2
    return tb, tq


def _attention_bds(q_bds, k_bds, out_dtype):
    """Batched attention on (B, C, S) slabs; V == q_bds. Returns (B, C, S)."""
    B, C, S = q_bds.shape
    gen = _tpu_generation()
    budget, vmem_limit = _vmem_plan(gen)
    tb, tq = _choose_tiles(B, C, S, q_bds.dtype, out_dtype, budget)
    grid = (B // tb, S // tq)

    exact = jnp.dtype(q_bds.dtype) == jnp.dtype(jnp.float32)
    # bf16 EUP exists on v6e/v7x; keep f32 exp on v5e / unknown / exact path.
    exp_dtype = jnp.bfloat16 if (gen >= 6 and not exact) else jnp.float32
    kernel = _make_kernel(exp_dtype, approx_recip=not exact)

    in_spec = pl.BlockSpec((tb, C, S), lambda b, q: (b, 0, 0))
    out_spec = pl.BlockSpec((tb, C, tq), lambda b, q: (b, 0, q))

    cost = pl.CostEstimate(
        flops=int(B * S * S * (4 * C + 2)),
        transcendentals=int(B * S * S),
        bytes_accessed=int(2 * B * C * S * q_bds.dtype.itemsize
                           + B * C * S * jnp.dtype(out_dtype).itemsize),
    )

    return pl.pallas_call(
        kernel,
        out_shape=jax.ShapeDtypeStruct((B, C, S), out_dtype),
        grid_spec=pltpu.PrefetchScalarGridSpec(
            num_scalar_prefetch=0,
            grid=grid,
            in_specs=[in_spec, in_spec],
            out_specs=out_spec,
        ),
        compiler_params=pltpu.CompilerParams(
            # Only the batch axis is parallel: megacore (v7x) shards it instead
            # of duplicating the full-S K/V block on both cores.
            dimension_semantics=("parallel", "arbitrary"),
            vmem_limit_bytes=vmem_limit,
        ),
        cost_estimate=cost,
    )(q_bds, k_bds)


def symbol_attention(x, symbol, *, compute_dtype=jnp.bfloat16):
    """JAX/Pallas equivalent of SymbolAttention.forward. x, symbol: (n, c, h, w, l)."""
    assert symbol.shape == x.shape, "input and symbol should have same shape"
    n, c, h, w, l = x.shape
    S = w * l
    cdt = jnp.dtype(compute_dtype) if compute_dtype is not None else x.dtype

    def to_bds(t):
        # (n, c, h, w, l) -> (n, c, h, S) [free] -> (n, h, c, S) -> (n*h, c, S)
        # Single relayout pass fused with the (optional) cast to the MXU dtype.
        t = t.reshape(n, c, h, S)
        t = jnp.transpose(t, (0, 2, 1, 3)).astype(cdt)
        return t.reshape(n * h, c, S)

    q = to_bds(x)        # Q (and V) source
    k = to_bds(symbol)   # K

    out = _attention_bds(q, k, x.dtype)                  # (n*h, c, S)

    # TODO(synk): fold the input/output relayouts into the kernel by blocking
    # the raw (n, c, h, S) layout; deferred because with small h the required
    # size-1 / sub-8 sublane block dims conflict with the (8, 128) BlockSpec
    # constraint and in-kernel sublane-dim slicing.
    out = out.reshape(n, h, c, S)
    out = jnp.transpose(out, (0, 2, 1, 3))               # (n, c, h, S)
    return out.reshape(n, c, h, w, l)


def _reference(x, symbol):
    """Pure-JAX f32 reference matching F.scaled_dot_product_attention semantics."""
    n, c, h, w, l = x.shape
    S = w * l
    q = jnp.transpose(x.reshape(n, c, h, S), (0, 2, 3, 1))       # (n, h, S, c)
    k = jnp.transpose(symbol.reshape(n, c, h, S), (0, 2, 3, 1))  # (n, h, S, c)
    scale = 1.0 / jnp.sqrt(jnp.float32(c))
    s = jnp.einsum("nhqc,nhkc->nhqk", q, k) * scale
    p = jax.nn.softmax(s, axis=-1)
    o = jnp.einsum("nhqk,nhkc->nhqc", p, q)                      # V == x
    o = jnp.transpose(o, (0, 3, 1, 2))                           # (n, c, h, S)
    return o.reshape(n, c, h, w, l)


if __name__ == "__main__":
    # SymbolAttention has no learnable parameters; only inputs are needed.
    key = jax.random.PRNGKey(0)
    kx, ks = jax.random.split(key)
    n, c, h, w, l = 2, 8, 4, 16, 8          # S = w*l = 128 (one full lane row)
    x = jax.random.normal(kx, (n, c, h, w, l), dtype=jnp.float32)
    symbol = jax.random.normal(ks, (n, c, h, w, l), dtype=jnp.float32)

    ref = jax.block_until_ready(_reference(x, symbol))

    # Full-precision path (f32 MXU inputs, f32 exp, exact reciprocal).
    run_f32 = jax.jit(lambda a, b: symbol_attention(a, b, compute_dtype=jnp.float32))
    out_f32 = jax.block_until_ready(run_f32(x, symbol))
    assert out_f32.shape == (n, c, h, w, l)
    assert jnp.allclose(out_f32, ref, atol=1e-3, rtol=1e-3), "f32 kernel mismatch vs reference"

    # Default fast path (bf16 MXU inputs, f32 accumulation, bf16 exp on
    # v6e/v7x, approximate reciprocal).
    run_fast = jax.jit(lambda a, b: symbol_attention(a, b))
    out_fast = jax.block_until_ready(run_fast(x, symbol))
    assert out_fast.shape == (n, c, h, w, l)
    assert jnp.allclose(out_fast, ref, atol=5e-2, rtol=5e-2), "bf16 kernel mismatch vs reference"

    print("KERNEL_OK")
</pallas_src>

<mosaic_0001>
module attributes {stable_mosaic.version = 11 : i64} {
  func.func @kernel(%arg0: i32, %arg1: i32, %arg2: memref<4x8x128xf32, #tpu.memory_space<vmem>>, %arg3: memref<4x8x128xf32, #tpu.memory_space<vmem>>, %arg4: memref<4x8x128xf32, #tpu.memory_space<vmem>>) attributes {dimension_semantics = [#tpu.dimension_semantics<parallel>, #tpu.dimension_semantics<arbitrary>], iteration_bounds = array<i64: 2, 1>, scalar_prefetch = 0 : i64, scratch_operands = 0 : i64, tpu.core_type = #tpu.core_type<tc>, window_params = [{transform_indices = @transform_0, window_bounds = array<i64: 4, 8, 128>}, {transform_indices = @transform_1, window_bounds = array<i64: 4, 8, 128>}, {transform_indices = @transform_2, window_bounds = array<i64: 4, 8, 128>}]} {
    %cst = arith.constant 1.000000e+00 : f32
    %0 = vector.broadcast %cst : f32 to vector<1x128xf32>
    %c0_i32 = arith.constant 0 : i32
    %c4_i32 = arith.constant 4 : i32
    %1 = arith.addi %c0_i32, %c4_i32 : i32
    %c1_i32 = arith.constant 1 : i32
    scf.for %arg5 = %c0_i32 to %1 step %c1_i32  : i32 {
      %2 = arith.index_cast %arg5 : i32 to index
      %c0 = arith.constant 0 : index
      %c0_1 = arith.constant 0 : index
      %3 = vector.load %arg2[%2, %c0, %c0_1] : memref<4x8x128xf32, #tpu.memory_space<vmem>>, vector<1x8x128xf32>
      %4 = vector.shape_cast %3 : vector<1x8x128xf32> to vector<8x128xf32>
      %5 = arith.index_cast %arg5 : i32 to index
      %c0_2 = arith.constant 0 : index
      %c0_3 = arith.constant 0 : index
      %6 = vector.load %arg3[%5, %c0_2, %c0_3] : memref<4x8x128xf32, #tpu.memory_space<vmem>>, vector<1x8x128xf32>
      %7 = vector.shape_cast %6 : vector<1x8x128xf32> to vector<8x128xf32>
      %cst_4 = arith.constant 0.353553385 : f32
      %8 = vector.broadcast %cst_4 : f32 to vector<8x128xf32>
      %9 = arith.mulf %4, %8 : vector<8x128xf32>
      %cst_5 = arith.constant dense<0.000000e+00> : vector<128x128xf32>
      %10 = tpu.matmul %9, %7, %cst_5 {dimension_numbers = #tpu.dot_dimension_numbers<[0], [0], [1], [1], [0, 1, 1, 1], [], []>} : vector<8x128xf32>, vector<8x128xf32>, vector<128x128xf32> -> vector<128x128xf32>
      %cst_6 = arith.constant dense<0xFF800000> : vector<128xf32>
      %11 = vector.multi_reduction <maximumf>, %10, %cst_6 [1] : vector<128x128xf32> to vector<128xf32>
      %12 = vector.shape_cast %11 : vector<128xf32> to vector<128x1xf32>
      %13 = vector.broadcast %12 : vector<128x1xf32> to vector<128x128xf32>
      %14 = arith.subf %10, %13 : vector<128x128xf32>
      %15 = math.exp %14 : vector<128x128xf32>
      %cst_7 = arith.constant dense<0.000000e+00> : vector<8x128xf32>
      %16 = tpu.matmul %4, %15, %cst_7 {dimension_numbers = #tpu.dot_dimension_numbers<[1], [1], [0], [0], [0, 0, 1, 0], [], []>} : vector<8x128xf32>, vector<128x128xf32>, vector<8x128xf32> -> vector<8x128xf32>
      %cst_8 = arith.constant dense<0.000000e+00> : vector<1x128xf32>
      %17 = tpu.matmul %0, %15, %cst_8 {dimension_numbers = #tpu.dot_dimension_numbers<[1], [1], [0], [0], [0, 0, 1, 0], [], []>} : vector<1x128xf32>, vector<128x128xf32>, vector<1x128xf32> -> vector<1x128xf32>
      %18 = tpu.reciprocal %17 : vector<1x128xf32> -> vector<1x128xf32>
      %19 = vector.broadcast %18 : vector<1x128xf32> to vector<8x128xf32>
      %20 = arith.mulf %16, %19 : vector<8x128xf32>
      %21 = arith.index_cast %arg5 : i32 to index
      %c0_9 = arith.constant 0 : index
      %c0_10 = arith.constant 0 : index
      %22 = vector.load %arg4[%21, %c0_9, %c0_10] : memref<4x8x128xf32, #tpu.memory_space<vmem>>, vector<1x8x128xf32>
      %23 = vector.shape_cast %22 : vector<1x8x128xf32> to vector<8x128xf32>
      %24 = vector.shape_cast %20 : vector<8x128xf32> to vector<1x8x128xf32>
      tpu.vector_store %arg4[%21, %c0_9, %c0_10], %24 {strides = array<i32>} : memref<4x8x128xf32, #tpu.memory_space<vmem>>, vector<1x8x128xf32>,
    }
    %c4_i32_0 = arith.constant 4 : i32
    return
  }
  func.func @transform_0(%arg0: i32, %arg1: i32) -> (i32, i32, i32) {
    %c0_i32 = arith.constant 0 : i32
    %c0_i32_0 = arith.constant 0 : i32
    %c0_i32_1 = arith.constant 0 : i32
    return %arg0, %c0_i32, %c0_i32_0 : i32, i32, i32
  }
  func.func @transform_1(%arg0: i32, %arg1: i32) -> (i32, i32, i32) {
    %c0_i32 = arith.constant 0 : i32
    %c0_i32_0 = arith.constant 0 : i32
    %c0_i32_1 = arith.constant 0 : i32
    return %arg0, %c0_i32, %c0_i32_0 : i32, i32, i32
  }
  func.func @transform_2(%arg0: i32, %arg1: i32) -> (i32, i32, i32) {
    %c0_i32 = arith.constant 0 : i32
    %c0_i32_0 = arith.constant 0 : i32
    return %arg0, %c0_i32, %arg1 : i32, i32, i32
  }
}

</mosaic_0001>

<bundles_post_ra>
// kernel: _lambda_.1
= control target key start
LH: loop header
LB: loop body
LE: loop exit
PB: predicated region body
PF: predicated region fallthrough
CT: control target
= control target key end

     0   :  { %s1049_s9 = smov 0   ;;  %s1051_s10 = smov 0   ;;  %s1213_s0 = inlined_call_operand.vmem [shape: f32[8,8,128], index: 0, kind: input, shape index: {}]   ;;  %s1214_s1 = inlined_call_operand.vmem [shape: f32[8,8,128], index: 1, kind: input, shape index: {}]   ;;  %s1215_s2 = inlined_call_operand.vmem [shape: f32[8,8,128], index: 2, kind: output, shape index: {}]  }
   0x1   :  { %s1053_s11 = smov 0  }
   0x2 LB: > { %s24_s12 = sadd.s32 1, %s1021_s10  ;;  %p757_p0 = scmp.ge.s32.totalorder %s1025_s11, 1  ;;  %s1025_s11 = sphi %s1053_s11, %s12_s11   ;;  %s1021_s10 = sphi %s1051_s10, %s1217_s10   ;;  %s1017_s9 = sphi %s1049_s9, %s1216_s9  }
   0x3   : > { %p26_p1 = scmp.ge.s32.totalorder %s24_s12, 2  ;;  %p138_p2 = scmp.lt.s32.totalorder %s1025_s11, 3 }
   0x5   : > { %s1219_s12 = smov (%p26_p1, %s24_s12), 0  ;;  %p139_p3 = pnand %p757_p0, %p138_p2 }
   0x6   : > { %s758_s13 = sshll.u32 (!%p139_p3), %s1017_s9, 2  ;;  %s1081_s24 = smov (!%p139_p3), 0  }
   0x7   : > { %142 = sbr.rel (%p139_p3) target bundleno = 830 (0x33e), region = 28  ;;  %p169_p4 = scmp.lt.s32.totalorder (!%p139_p3), %s758_s13, 7 }
   0xc   : > { %s1221_s13 = smov (!%p169_p4, %s758_s13), 7 }
   0xd   : > { %s1067_s14 = sshll.u32 %s1221_s13, 3 }
   0xe   : > { %s172_s17 = scalar_lea.vmem %s1213_s0, %s1067_s14  ;;  %s178_s20 = scalar_lea.vmem %s1214_s1, %s1067_s14 }
   0xf   : > { %s187_s23 = scalar_lea.vmem %s1215_s2, %s1067_s14 }
  0x10 LB: >> { %s1087_s25 = sshll.u32 %s1029_s24, 3  ;;  %vm233_vm0 = vcmask 64512   ;;  %v1031_v35 = vmov 0.0   ;;  %vm1032_vm1 = vmmov 0   ;;  %s194_s24 = sadd.s32 1, %s1029_s24   ;;  %s1029_s24 = sphi %s1081_s24, %s194_s24  }
  0x11   : >> { %s196_s28 = scalar_lea.vmem %s172_s17, %s1087_s25  ;;  %s198_s3 = scalar_lea.vmem %s178_s20, %s1087_s25  ;;  %860 = vmatprep.subr.mxu1 %v1031_v35  ;;  %892 = vmatprep.mubr.msk.f32.mxu1 %vm1032_vm1, %v1031_v35 }
  0x12   : >> { %v1095_v0 = vld [vmem:[%s196_s28] sm:$0xff]  ;;  %s653_s6 = scalar_lea.vmem %s187_s23, %s1087_s25  ;;  %p191_p5 = scmp.ge.s32.totalorder %s194_s24, 4  }
  0x13   : >> { %v200_v1 = vmul.f32 0.35355338, %v1095_v0  ;;  %v199_v2 = vld [vmem:[%s198_s3] sm:$0xff] }
  0x14   : >> { %834 = vmatprep.subr.mxu0 %v199_v2 }
  0x15   : >> { %201 = vxpose.xlu0.b32.start.end [1/1] (short) %v200_v1, 128  ;;  %835 = vmatpush3.msra.mxu0 %v199_v2 }
  0x16   : >> { %895 = vmatprep.subr.mxu0 %v1031_v35 }
  0x91   : >> { %v217_v3 = vpop.trf.xlu0 }
  0x92   : >> { %836 = vmatprep.mubr.msk.f32.mxu0 %vm233_vm0, %v217_v3 }
  0x95   : >> { %v218_v4 = vpop.trf.xlu0 }
  0x96   : >> { %837 = vmatmul.mubr.msk.f32.vlgmr.msra.gmra.mxu0 %vm233_vm0, %v218_v4 }
  0x99   : >> { %v219_v5 = vpop.trf.xlu0 }
  0x9a   : >> { %839 = vmatprep.mubr.msk.f32.mxu0 %vm233_vm0, %v219_v5 }
  0x9d   : >> { %v220_v6 = vpop.trf.xlu0 }
  0x9e   : >> { %840 = vmatmul.mubr.msk.f32.gmra.mxu0 %vm233_vm0, %v220_v6 }
  0xa1   : >> { %v221_v7 = vpop.trf.xlu0 }
  0xa2   : >> { %842 = vmatprep.mubr.msk.f32.mxu0 %vm233_vm0, %v221_v7 }
  0xa5   : >> { %v222_v8 = vpop.trf.xlu0 }
  0xa6   : >> { %843 = vmatmul.mubr.msk.f32.gmra.mxu0 %vm233_vm0, %v222_v8 }
  0xa9   : >> { %v223_v9 = vpop.trf.xlu0 }
  0xaa   : >> { %845 = vmatprep.mubr.msk.f32.mxu0 %vm233_vm0, %v223_v9 }
  0xad   : >> { %v224_v10 = vpop.trf.xlu0 }
  0xae   : >> { %846 = vmatmul.mubr.msk.f32.gmra.mxu0 %vm233_vm0, %v224_v10 }
  0xb1   : >> { %v225_v11 = vpop.trf.xlu0 }
  0xb2   : >> { %848 = vmatprep.mubr.msk.f32.mxu0 %vm233_vm0, %v225_v11 }
  0xb5   : >> { %v226_v12 = vpop.trf.xlu0 }
  0xb6   : >> { %849 = vmatmul.mubr.msk.f32.gmra.mxu0 %vm233_vm0, %v226_v12 }
  0xb9   : >> { %v227_v13 = vpop.trf.xlu0 }
  0xba   : >> { %851 = vmatprep.mubr.msk.f32.mxu0 %vm233_vm0, %v227_v13 }
  0xbd   : >> { %v228_v14 = vpop.trf.xlu0 }
  0xbe   : >> { %852 = vmatmul.mubr.msk.f32.gmra.mxu0 %vm233_vm0, %v228_v14 }
  0xc1   : >> { %v229_v15 = vpop.trf.xlu0 }
  0xc2   : >> { %854 = vmatprep.mubr.msk.f32.mxu0 %vm233_vm0, %v229_v15 }
  0xc5   : >> { %v230_v16 = vpop.trf.xlu0 }
  0xc6   : >> { %855 = vmatmul.mubr.msk.f32.gmra.mxu0 %vm233_vm0, %v230_v16 }
  0xc9   : >> { %v231_v17 = vpop.trf.xlu0 }
  0xca   : >> { %857 = vmatprep.mubr.msk.f32.mxu0 %vm233_vm0, %v231_v17 }
  0xcd   : >> { %v232_v18 = vpop.trf.xlu0 }
  0xce   : >> { %858 = vmatmul.mubr.msk.f32.gmra.mxu0 %vm233_vm0, %v232_v18 }
  0xcf   : >> { %927 = vmatprep.mubr.msk.f32.mxu0 %vm1032_vm1, %v1031_v35 }
 0x156   : >> { %v1120_v19 = vpop.f32.mrf.mxu0 }
 0x158   : >> { %v1122_v20 = vpop.f32.mrf.mxu0 }
 0x15e   : >> { %v1124_v21 = vpop.f32.mrf.mxu0 }
 0x160   : >> { %v1126_v22 = vpop.f32.mrf.mxu0 }
 0x166   : >> { %v1128_v23 = vpop.f32.mrf.mxu0 }
 0x168   : >> { %v1130_v24 = vpop.f32.mrf.mxu0 }
 0x16e   : >> { %v1132_v25 = vpop.f32.mrf.mxu0 }
 0x170   : >> { %v1134_v26 = vpop.f32.mrf.mxu0 }
 0x176   : >> { %v1136_v27 = vpop.f32.mrf.mxu0 }
 0x178   : >> { %v1138_v28 = vpop.f32.mrf.mxu0 }
 0x17e   : >> { %v853_v29 = vpop.f32.mrf.mxu0 }
 0x180   : >> { %v398_v30 = vpop.f32.mrf.mxu0 }
 0x186   : >> { %v856_v31 = vpop.f32.mrf.mxu0 }
 0x188   : >> { %v408_v32 = vpop.f32.mrf.mxu0 }
 0x18e   : >> { %v859_v33 = vpop.f32.mrf.mxu0 }
 0x18f   : >> { %457 = vmax.xlane.f32.xlu0 %v859_v33 }
 0x190   : >> { %v418_v34 = vpop.f32.mrf.mxu0 }
 0x191   : >> { %455 = vmax.xlane.f32.xlu1 %v418_v34 }
 0x195   : >> { %453 = vmax.xlane.f32.xlu1 %v856_v31 }
 0x199   : >> { %451 = vmax.xlane.f32.xlu1 %v408_v32 }
 0x19d   : >> { %449 = vmax.xlane.f32.xlu1 %v853_v29 }
 0x1a1   : >> { %447 = vmax.xlane.f32.xlu1 %v398_v30 }
 0x1a5   : >> { %445 = vmax.xlane.f32.xlu1 %v1136_v27 }
 0x1a9   : >> { %443 = vmax.xlane.f32.xlu1 %v1138_v28 }
 0x1ad   : >> { %441 = vmax.xlane.f32.xlu1 %v1132_v25 }
 0x1b1   : >> { %439 = vmax.xlane.f32.xlu1 %v1134_v26 }
 0x1b5   : >> { %437 = vmax.xlane.f32.xlu1 %v1128_v23 }
 0x1b9   : >> { %435 = vmax.xlane.f32.xlu1 %v1130_v24 }
 0x1bd   : >> { %433 = vmax.xlane.f32.xlu1 %v1124_v21 }
 0x1c1   : >> { %431 = vmax.xlane.f32.xlu1 %v1126_v22 }
 0x1c5   : >> { %429 = vmax.xlane.f32.xlu1 %v1120_v19 }
 0x1c9   : >> { %427 = vmax.xlane.f32.xlu1 %v1122_v20 }
 0x218   : >> { %v458_v36 = vpop.xlane.xlu0 %457 }
 0x219   : >> { %v474_v37 = vsub.f32 %v859_v33, %v458_v36 }
 0x21a   : >> { %v456_v38 = vpop.xlane.xlu1 %455 }
 0x21b   : >> { %v505_v39 = vmul.f32 1.442695, %v474_v37  ;;  %v473_v40 = vsub.f32 %v418_v34, %v456_v38  ;;  %v1033_v38 = vmov 1.0  }
 0x21d   : >> { %965 = vpow2.f32 %v505_v39  ;;  %v503_v41 = vmul.f32 1.442695, %v473_v40 }
 0x21e   : >> { %v454_v42 = vpop.xlane.xlu1 %453 }
 0x21f   : >> { %v472_v43 = vsub.f32 %v856_v31, %v454_v42  ;;  %967 = vpow2.f32 %v503_v41 }
 0x221   : >> { %v501_v44 = vmul.f32 1.442695, %v472_v43  ;;  %v648_v43 = vlaneseq }
 0x222   : >> { %v452_v45 = vpop.xlane.xlu1 %451 }
 0x223   : >> { %v471_v46 = vsub.f32 %v408_v32, %v452_v45  ;;  %969 = vpow2.f32 %v501_v44  ;;  %v649_v44 = vshrl.u32 %v648_v43, 7 }
 0x225   : >> { %v499_v47 = vmul.f32 1.442695, %v471_v46  ;;  %v650_v45 = vsub.s32 0, %v649_v44 }
 0x226   : >> { %v450_v48 = vpop.xlane.xlu1 %449 }
 0x227   : >> { %v470_v49 = vsub.f32 %v853_v29, %v450_v48  ;;  %971 = vpow2.f32 %v499_v47 }
 0x229   : >> { %v497_v50 = vmul.f32 1.442695, %v470_v49 }
 0x22a   : >> { %v966_v51 = vpop.eup %965  ;;  %v448_v52 = vpop.xlane.xlu1 %447 }
 0x22b   : >> { %v469_v53 = vsub.f32 %v398_v30, %v448_v52  ;;  %861 = vmatpush3.xpose.msra.mxu1 %v966_v51  ;;  %896 = vmatpush3.xpose.msra.mxu0 %v966_v51  ;;  %973 = vpow2.f32 %v497_v50 }
 0x22c   : >> { %862 = vmatprep.subr.mxu1 %v1031_v35  ;;  %897 = vmatprep.subr.mxu0 %v1031_v35  ;;  %v968_v55 = vpop.eup %967 }
 0x22d   : >> { %v495_v54 = vmul.f32 1.442695, %v469_v53 }
 0x22e   : >> { %v446_v56 = vpop.xlane.xlu1 %445 }
 0x22f   : >> { %v468_v57 = vsub.f32 %v1136_v27, %v446_v56  ;;  %863 = vmatpush3.xpose.msra.mxu1 %v968_v55  ;;  %898 = vmatpush3.xpose.msra.mxu0 %v968_v55  ;;  %975 = vpow2.f32 %v495_v54 }
 0x230   : >> { %864 = vmatprep.subr.mxu1 %v1031_v35  ;;  %899 = vmatprep.subr.mxu0 %v1031_v35  ;;  %v970_v59 = vpop.eup %969 }
 0x231   : >> { %v493_v58 = vmul.f32 1.442695, %v468_v57 }
 0x232   : >> { %v444_v60 = vpop.xlane.xlu1 %443 }
 0x233   : >> { %v467_v61 = vsub.f32 %v1138_v28, %v444_v60  ;;  %865 = vmatpush3.xpose.msra.mxu1 %v970_v59  ;;  %900 = vmatpush3.xpose.msra.mxu0 %v970_v59  ;;  %977 = vpow2.f32 %v493_v58 }
 0x234   : >> { %866 = vmatprep.subr.mxu1 %v1031_v35  ;;  %901 = vmatprep.subr.mxu0 %v1031_v35  ;;  %v972_v63 = vpop.eup %971 }
 0x235   : >> { %v491_v62 = vmul.f32 1.442695, %v467_v61 }
 0x236   : >> { %v442_v1 = vpop.xlane.xlu1 %441 }
 0x237   : >> { %v466_v2 = vsub.f32 %v1132_v25, %v442_v1  ;;  %867 = vmatpush3.xpose.msra.mxu1 %v972_v63  ;;  %902 = vmatpush3.xpose.msra.mxu0 %v972_v63  ;;  %979 = vpow2.f32 %v491_v62 }
 0x238   : >> { %868 = vmatprep.subr.mxu1 %v1031_v35  ;;  %903 = vmatprep.subr.mxu0 %v1031_v35  ;;  %v974_v4 = vpop.eup %973 }
 0x239   : >> { %v489_v3 = vmul.f32 1.442695, %v466_v2 }
 0x23a   : >> { %v440_v5 = vpop.xlane.xlu1 %439 }
 0x23b   : >> { %v465_v6 = vsub.f32 %v1134_v26, %v440_v5  ;;  %869 = vmatpush3.xpose.msra.mxu1 %v974_v4  ;;  %904 = vmatpush3.xpose.msra.mxu0 %v974_v4  ;;  %981 = vpow2.f32 %v489_v3 }
 0x23c   : >> { %870 = vmatprep.subr.mxu1 %v1031_v35  ;;  %905 = vmatprep.subr.mxu0 %v1031_v35  ;;  %v976_v8 = vpop.eup %975 }
 0x23d   : >> { %v487_v7 = vmul.f32 1.442695, %v465_v6 }
 0x23e   : >> { %v438_v9 = vpop.xlane.xlu1 %437 }
 0x23f   : >> { %v464_v10 = vsub.f32 %v1128_v23, %v438_v9  ;;  %871 = vmatpush3.xpose.msra.mxu1 %v976_v8  ;;  %906 = vmatpush3.xpose.msra.mxu0 %v976_v8  ;;  %983 = vpow2.f32 %v487_v7 }
 0x240   : >> { %872 = vmatprep.subr.mxu1 %v1031_v35  ;;  %907 = vmatprep.subr.mxu0 %v1031_v35  ;;  %v978_v12 = vpop.eup %977 }
 0x241   : >> { %v485_v11 = vmul.f32 1.442695, %v464_v10 }
 0x242   : >> { %v436_v13 = vpop.xlane.xlu1 %435 }
 0x243   : >> { %v463_v14 = vsub.f32 %v1130_v24, %v436_v13  ;;  %873 = vmatpush3.xpose.msra.mxu1 %v978_v12  ;;  %908 = vmatpush3.xpose.msra.mxu0 %v978_v12  ;;  %985 = vpow2.f32 %v485_v11 }
 0x244   : >> { %874 = vmatprep.subr.mxu1 %v1031_v35  ;;  %909 = vmatprep.subr.mxu0 %v1031_v35  ;;  %v980_v16 = vpop.eup %979 }
 0x245   : >> { %v483_v15 = vmul.f32 1.442695, %v463_v14 }
 0x246   : >> { %v434_v17 = vpop.xlane.xlu1 %433 }
 0x247   : >> { %v462_v18 = vsub.f32 %v1124_v21, %v434_v17  ;;  %875 = vmatpush3.xpose.msra.mxu1 %v980_v16  ;;  %910 = vmatpush3.xpose.msra.mxu0 %v980_v16  ;;  %987 = vpow2.f32 %v483_v15 }
 0x248   : >> { %876 = vmatprep.subr.mxu1 %v1031_v35  ;;  %911 = vmatprep.subr.mxu0 %v1031_v35  ;;  %v982_v24 = vpop.eup %981 }
 0x249   : >> { %v481_v23 = vmul.f32 1.442695, %v462_v18 }
 0x24a   : >> { %v432_v25 = vpop.xlane.xlu1 %431 }
 0x24b   : >> { %v461_v26 = vsub.f32 %v1126_v22, %v432_v25  ;;  %877 = vmatpush3.xpose.msra.mxu1 %v982_v24  ;;  %912 = vmatpush3.xpose.msra.mxu0 %v982_v24  ;;  %989 = vpow2.f32 %v481_v23 }
 0x24c   : >> { %878 = vmatprep.subr.mxu1 %v1031_v35  ;;  %913 = vmatprep.subr.mxu0 %v1031_v35  ;;  %v984_v27 = vpop.eup %983 }
 0x24d   : >> { %v479_v21 = vmul.f32 1.442695, %v461_v26 }
 0x24e   : >> { %v430_v28 = vpop.xlane.xlu1 %429 }
 0x24f   : >> { %v460_v29 = vsub.f32 %v1120_v19, %v430_v28  ;;  %879 = vmatpush3.xpose.msra.mxu1 %v984_v27  ;;  %914 = vmatpush3.xpose.msra.mxu0 %v984_v27  ;;  %991 = vpow2.f32 %v479_v21 }
 0x250   : >> { %880 = vmatprep.subr.mxu1 %v1031_v35  ;;  %915 = vmatprep.subr.mxu0 %v1031_v35  ;;  %v986_v30 = vpop.eup %985 }
 0x251   : >> { %v477_v22 = vmul.f32 1.442695, %v460_v29 }
 0x252   : >> { %v428_v31 = vpop.xlane.xlu1 %427 }
 0x253   : >> { %v459_v32 = vsub.f32 %v1122_v20, %v428_v31  ;;  %881 = vmatpush3.xpose.msra.mxu1 %v986_v30  ;;  %916 = vmatpush3.xpose.msra.mxu0 %v986_v30  ;;  %993 = vpow2.f32 %v477_v22 }
 0x254   : >> { %882 = vmatprep.subr.mxu1 %v1031_v35  ;;  %917 = vmatprep.subr.mxu0 %v1031_v35  ;;  %v988_v33 = vpop.eup %987 }
 0x255   : >> { %v475_v19 = vmul.f32 1.442695, %v459_v32 }
 0x257   : >> { %883 = vmatpush3.xpose.msra.mxu1 %v988_v33  ;;  %918 = vmatpush3.xpose.msra.mxu0 %v988_v33  ;;  %995 = vpow2.f32 %v475_v19 }
 0x258   : >> { %884 = vmatprep.subr.mxu1 %v1031_v35  ;;  %919 = vmatprep.subr.mxu0 %v1031_v35  ;;  %v990_v34 = vpop.eup %989 }
 0x25b   : >> { %885 = vmatpush3.xpose.msra.mxu1 %v990_v34  ;;  %920 = vmatpush3.xpose.msra.mxu0 %v990_v34 }
 0x25c   : >> { %886 = vmatprep.subr.mxu1 %v1031_v35  ;;  %921 = vmatprep.subr.mxu0 %v1031_v35  ;;  %v992_v20 = vpop.eup %991 }
 0x25f   : >> { %887 = vmatpush3.xpose.msra.mxu1 %v992_v20  ;;  %922 = vmatpush3.xpose.msra.mxu0 %v992_v20 }
 0x260   : >> { %888 = vmatprep.subr.mxu1 %v1031_v35  ;;  %923 = vmatprep.subr.mxu0 %v1031_v35  ;;  %v994_v36 = vpop.eup %993 }
 0x263   : >> { %889 = vmatpush3.xpose.msra.mxu1 %v994_v36  ;;  %924 = vmatpush3.xpose.msra.mxu0 %v994_v36 }
 0x264   : >> { %890 = vmatprep.subr.mxu1 %v1031_v35  ;;  %925 = vmatprep.subr.mxu0 %v1031_v35  ;;  %v996_v37 = vpop.eup %995 }
 0x267   : >> { %891 = vmatpush3.xpose.msra.mxu1 %v996_v37  ;;  %926 = vmatpush3.xpose.msra.mxu0 %v996_v37 }
 0x26a   : >> { %928 = vmatmul.mubr.f32.vlgmr.msra.gmra.mxu0 %v1033_v38  ;;  %893 = vmatmul.mubr.f32.vlgmr.msra.gmra.mxu1 %v1095_v0 }
 0x32a   : >> { %v643_v39 = vpop.f32.mrf.mxu0  ;;  %v573_v40 = vpop.f32.mrf.mxu1 }
 0x32b   : >> { %997 = vrcp.f32 %v643_v39 }
 0x32c   : >> { %v929_v41 = vpop.f32.mrf.mxu0  ;;  %v894_v42 = vpop.f32.mrf.mxu1 }
 0x338   : >> { %v998_v46 = vpop.eup %997 }
 0x339   : >> { %v651_v47 = vrot.slane %v998_v46, %v650_v45  ;;  %193 = sbr.rel (!%p191_p5) target bundleno = 16 (0x10), region = 71 }
 0x33b   : >> { %v652_v35 = vmul.f32 %v651_v47, %v573_v40 }
 0x33d   : >> { %654 = vst [vmem:[%s653_s6] sm:$0xff] %v652_v35 }
 0x33e PF: > { %s12_s11 = sadd.s32 1, %s1025_s11   ;;  %s1216_s9 = smov %s1021_s10 }
 0x33f   : > { %p9_p6 = scmp.ge.s32.totalorder %s12_s11, 4   ;;  %s1217_s10 = smov %s1219_s12 }
 0x341   :  { %11 = sbr.rel (!%p9_p6) target bundleno = 2 (0x2), region = 82 }

</bundles_post_ra>
